<compile_context>
chip_gen: v5e
topology: v5e:2x2
jax: 0.10.0
libtpu: 0.0.40
codegen_flags: <defaults>
</compile_context>

<pallas_src>
import math

import jax
import jax.numpy as jnp
from jax import lax
from jax.experimental import pallas as pl
from jax.experimental.pallas import tpu as pltpu


def a2c_value_kernel(x_ref, w1_ref, b1_ref, w2_ref, b2_ref, w3t_ref, b3_ref, o_ref):
    # x tile: (TILE_B, F) — batch on sublanes, features on lanes.  The cast
    # mirrors the module's x.float() (no-op for f32 inputs, free VPU op else).
    x = x_ref[...].astype(jnp.float32)

    # Layer 1: contract both last (F) dims -> h1^T of shape (H, TILE_B).
    # No physical transpose of the x tile is materialized.
    h1 = lax.dot_general(
        w1_ref[...], x,
        dimension_numbers=(((1,), (1,)), ((), ())),
        preferred_element_type=jnp.float32)
    h1 = jnp.maximum(h1 + b1_ref[...], 0.0)                          # (H, TILE_B)

    # Layer 2: (H, H) @ (H, TILE_B) -> (H, TILE_B) on the MXU.
    h2 = jnp.maximum(
        jnp.dot(w2_ref[...], h1, preferred_element_type=jnp.float32)
        + b2_ref[...], 0.0)

    # Layer 3 (out=1): VPU broadcast-multiply + XLU sublane reduce; output is
    # a lane-dense (1, TILE_B) slab (batch on lanes).
    o = jnp.sum(h2 * w3t_ref[...], axis=0, keepdims=True) + b3_ref[...]
    o_ref[...] = o.astype(o_ref.dtype)


def _cdiv(a, b):
    return -(-a // b)


def a2c_value_forward(x, params, *, tile_b=8192):
    """x: (B, F); params in PyTorch layout W:(out,in), b:(out,1). Returns (B, 1) f32."""
    B, F = x.shape
    w1, b1 = params["w1"], params["b1"]
    w2, b2 = params["w2"], params["b2"]
    w3, b3 = params["w3"], params["b3"]
    H = w1.shape[0]

    # Batch tile sizing.
    if B <= 128:
        # Single tile exactly covering the batch (block dims equal to the full
        # array dims are always legal regardless of (8,128) alignment).
        tile_b = B
    else:
        # Lane-dense multiple of 128, large enough to amortize per-step grid
        # overhead, capped so there are >= 2 grid steps (v7x dual TensorCore),
        # and never exceeding B (so padding waste is bounded by the ragged
        # last block, < 128 columns).
        b_blocks = _cdiv(B, 128)
        tile_blocks = max(1, min(max(tile_b, 128) // 128, _cdiv(b_blocks, 2)))
        tile_b = tile_blocks * 128
    num_tiles = _cdiv(B, tile_b)     # ragged last tile handled by Pallas clamping

    w3t = w3.T                       # (H, 1)
    b3 = b3.reshape(1, 1)            # (1, 1)

    flops = 2 * B * (F * H + H * H + H)
    bytes_accessed = (x.size * x.dtype.itemsize + 4 * B
                      + 4 * (w1.size + b1.size + w2.size + b2.size
                             + w3t.size + b3.size))

    out_t = pl.pallas_call(
        a2c_value_kernel,
        out_shape=jax.ShapeDtypeStruct((1, B), jnp.float32),
        grid=(num_tiles,),
        in_specs=[
            pl.BlockSpec((tile_b, F), lambda i: (i, 0)),   # x tile (auto-pipelined)
            pl.BlockSpec((H, F), lambda i: (0, 0)),        # weights resident in VMEM
            pl.BlockSpec((H, 1), lambda i: (0, 0)),
            pl.BlockSpec((H, H), lambda i: (0, 0)),
            pl.BlockSpec((H, 1), lambda i: (0, 0)),
            pl.BlockSpec((H, 1), lambda i: (0, 0)),
            pl.BlockSpec((1, 1), lambda i: (0, 0)),
        ],
        out_specs=pl.BlockSpec((1, tile_b), lambda i: (0, i)),  # lane-dense output slab
        compiler_params=pltpu.CompilerParams(
            dimension_semantics=("parallel",),             # megacore sharding on v7x
            vmem_limit_bytes=32 * 1024 * 1024,             # safe on v5e/v6e/v7x
        ),
        cost_estimate=pl.CostEstimate(
            flops=int(flops), transcendentals=0,
            bytes_accessed=int(bytes_accessed)),
    )(x, w1, b1, w2, b2, w3t, b3)

    # Transpose of a (1, B) slab is layout-trivial (tiny, contiguous).
    return out_t.T                                         # (B, 1)


def init_params(key, input_shape, hidden=32):
    """Deterministic init mimicking nn.Linear's uniform(-1/sqrt(fan_in), +).

    Stored in PyTorch layout: W (out, in), b (out, 1).
    """
    ks = jax.random.split(key, 6)

    def linear(kw, kb, fan_in, fan_out):
        bound = 1.0 / math.sqrt(fan_in)
        w = jax.random.uniform(kw, (fan_out, fan_in), jnp.float32, -bound, bound)
        b = jax.random.uniform(kb, (fan_out, 1), jnp.float32, -bound, bound)
        return w, b

    w1, b1 = linear(ks[0], ks[1], input_shape, hidden)
    w2, b2 = linear(ks[2], ks[3], hidden, hidden)
    w3, b3 = linear(ks[4], ks[5], hidden, 1)
    return {"w1": w1, "b1": b1, "w2": w2, "b2": b2, "w3": w3, "b3": b3}


def _reference(x, params):
    h1 = jnp.maximum(x @ params["w1"].T + params["b1"].T, 0.0)
    h2 = jnp.maximum(h1 @ params["w2"].T + params["b2"].T, 0.0)
    return h2 @ params["w3"].T + params["b3"].T


if __name__ == "__main__":
    key = jax.random.PRNGKey(0)
    k_x, k_x2, k_p = jax.random.split(key, 3)

    input_shape = 16
    params = init_params(k_p, input_shape)

    # Small case: single tile covering the whole batch.
    batch = 8
    x = jax.random.normal(k_x, (batch, input_shape), dtype=jnp.float32)
    out = a2c_value_forward(x, params)
    jax.block_until_ready(out)
    ref = _reference(x, params)
    assert out.shape == (batch, 1)
    assert jnp.allclose(out, ref, atol=1e-5, rtol=1e-5)

    # Multi-tile case: exercises >=2 grid steps and the ragged last block
    # (no batch padding, OOB columns discarded by Pallas clamping).
    batch2 = 300
    x2 = jax.random.normal(k_x2, (batch2, input_shape), dtype=jnp.float32)
    out2 = a2c_value_forward(x2, params)
    jax.block_until_ready(out2)
    ref2 = _reference(x2, params)
    assert out2.shape == (batch2, 1)
    assert jnp.allclose(out2, ref2, atol=1e-5, rtol=1e-5)

    print("KERNEL_OK")
</pallas_src>

<mosaic_0001>
module attributes {stable_mosaic.version = 11 : i64} {
  func.func @a2c_value_kernel(%arg0: i32, %arg1: memref<8x16xf32, #tpu.memory_space<vmem>>, %arg2: memref<32x16xf32, #tpu.memory_space<vmem>>, %arg3: memref<32x1xf32, #tpu.memory_space<vmem>>, %arg4: memref<32x32xf32, #tpu.memory_space<vmem>>, %arg5: memref<32x1xf32, #tpu.memory_space<vmem>>, %arg6: memref<32x1xf32, #tpu.memory_space<vmem>>, %arg7: memref<1x1xf32, #tpu.memory_space<vmem>>, %arg8: memref<1x8xf32, #tpu.memory_space<vmem>>) attributes {dimension_semantics = [#tpu.dimension_semantics<parallel>], iteration_bounds = array<i64: 1>, scalar_prefetch = 0 : i64, scratch_operands = 0 : i64, tpu.core_type = #tpu.core_type<tc>, window_params = [{transform_indices = @transform_0, window_bounds = array<i64: 8, 16>}, {pipeline_mode = #tpu.pipeline_mode<synchronous>, transform_indices = @transform_1, window_bounds = array<i64: 32, 16>}, {pipeline_mode = #tpu.pipeline_mode<synchronous>, transform_indices = @transform_2, window_bounds = array<i64: 32, 1>}, {pipeline_mode = #tpu.pipeline_mode<synchronous>, transform_indices = @transform_3, window_bounds = array<i64: 32, 32>}, {pipeline_mode = #tpu.pipeline_mode<synchronous>, transform_indices = @transform_4, window_bounds = array<i64: 32, 1>}, {pipeline_mode = #tpu.pipeline_mode<synchronous>, transform_indices = @transform_5, window_bounds = array<i64: 32, 1>}, {pipeline_mode = #tpu.pipeline_mode<synchronous>, transform_indices = @transform_6, window_bounds = array<i64: 1, 1>}, {transform_indices = @transform_7, window_bounds = array<i64: 1, 8>}]} {
    %c0 = arith.constant 0 : index
    %c0_0 = arith.constant 0 : index
    %0 = vector.load %arg1[%c0, %c0_0] : memref<8x16xf32, #tpu.memory_space<vmem>>, vector<8x16xf32>
    %c0_1 = arith.constant 0 : index
    %c0_2 = arith.constant 0 : index
    %1 = vector.load %arg2[%c0_1, %c0_2] : memref<32x16xf32, #tpu.memory_space<vmem>>, vector<32x16xf32>
    %cst = arith.constant dense<0.000000e+00> : vector<32x8xf32>
    %2 = tpu.matmul %1, %0, %cst {dimension_numbers = #tpu.dot_dimension_numbers<[1], [1], [0], [0], [0, 0, 1, 0], [], []>} : vector<32x16xf32>, vector<8x16xf32>, vector<32x8xf32> -> vector<32x8xf32>
    %c0_3 = arith.constant 0 : index
    %c0_4 = arith.constant 0 : index
    %3 = vector.load %arg3[%c0_3, %c0_4] : memref<32x1xf32, #tpu.memory_space<vmem>>, vector<32x1xf32>
    %4 = vector.broadcast %3 : vector<32x1xf32> to vector<32x8xf32>
    %5 = arith.addf %2, %4 : vector<32x8xf32>
    %cst_5 = arith.constant 0.000000e+00 : f32
    %6 = vector.broadcast %cst_5 : f32 to vector<32x8xf32>
    %7 = arith.maximumf %5, %6 : vector<32x8xf32>
    %c0_6 = arith.constant 0 : index
    %c0_7 = arith.constant 0 : index
    %8 = vector.load %arg4[%c0_6, %c0_7] : memref<32x32xf32, #tpu.memory_space<vmem>>, vector<32x32xf32>
    %cst_8 = arith.constant dense<0.000000e+00> : vector<32x8xf32>
    %9 = tpu.matmul %8, %7, %cst_8 {dimension_numbers = #tpu.dot_dimension_numbers<[1], [0], [0], [1], [0, 0, 1, 1], [], []>} : vector<32x32xf32>, vector<32x8xf32>, vector<32x8xf32> -> vector<32x8xf32>
    %c0_9 = arith.constant 0 : index
    %c0_10 = arith.constant 0 : index
    %10 = vector.load %arg5[%c0_9, %c0_10] : memref<32x1xf32, #tpu.memory_space<vmem>>, vector<32x1xf32>
    %11 = vector.broadcast %10 : vector<32x1xf32> to vector<32x8xf32>
    %12 = arith.addf %9, %11 : vector<32x8xf32>
    %cst_11 = arith.constant 0.000000e+00 : f32
    %13 = vector.broadcast %cst_11 : f32 to vector<32x8xf32>
    %14 = arith.maximumf %12, %13 : vector<32x8xf32>
    %c0_12 = arith.constant 0 : index
    %c0_13 = arith.constant 0 : index
    %15 = vector.load %arg6[%c0_12, %c0_13] : memref<32x1xf32, #tpu.memory_space<vmem>>, vector<32x1xf32>
    %16 = vector.broadcast %15 : vector<32x1xf32> to vector<32x8xf32>
    %17 = arith.mulf %14, %16 : vector<32x8xf32>
    %cst_14 = arith.constant dense<0.000000e+00> : vector<8xf32>
    %18 = vector.multi_reduction <add>, %17, %cst_14 [0] : vector<32x8xf32> to vector<8xf32>
    %19 = vector.shape_cast %18 : vector<8xf32> to vector<1x8xf32>
    %c0_15 = arith.constant 0 : index
    %c0_16 = arith.constant 0 : index
    %20 = vector.load %arg7[%c0_15, %c0_16] : memref<1x1xf32, #tpu.memory_space<vmem>>, vector<1x1xf32>
    %21 = vector.broadcast %20 : vector<1x1xf32> to vector<1x8xf32>
    %22 = arith.addf %19, %21 : vector<1x8xf32>
    %c0_17 = arith.constant 0 : index
    %c0_18 = arith.constant 0 : index
    %23 = vector.load %arg8[%c0_17, %c0_18] : memref<1x8xf32, #tpu.memory_space<vmem>>, vector<1x8xf32>
    tpu.vector_store %arg8[%c0_17, %c0_18], %22 {strides = array<i32>} : memref<1x8xf32, #tpu.memory_space<vmem>>, vector<1x8xf32>,
    return
  }
  func.func @transform_0(%arg0: i32) -> (i32, i32) {
    %c0_i32 = arith.constant 0 : i32
    %c0_i32_0 = arith.constant 0 : i32
    return %arg0, %c0_i32 : i32, i32
  }
  func.func @transform_1(%arg0: i32) -> (i32, i32) {
    %c0_i32 = arith.constant 0 : i32
    %c0_i32_0 = arith.constant 0 : i32
    %c0_i32_1 = arith.constant 0 : i32
    return %c0_i32, %c0_i32_0 : i32, i32
  }
  func.func @transform_2(%arg0: i32) -> (i32, i32) {
    %c0_i32 = arith.constant 0 : i32
    %c0_i32_0 = arith.constant 0 : i32
    %c0_i32_1 = arith.constant 0 : i32
    return %c0_i32, %c0_i32_0 : i32, i32
  }
  func.func @transform_3(%arg0: i32) -> (i32, i32) {
    %c0_i32 = arith.constant 0 : i32
    %c0_i32_0 = arith.constant 0 : i32
    %c0_i32_1 = arith.constant 0 : i32
    return %c0_i32, %c0_i32_0 : i32, i32
  }
  func.func @transform_4(%arg0: i32) -> (i32, i32) {
    %c0_i32 = arith.constant 0 : i32
    %c0_i32_0 = arith.constant 0 : i32
    %c0_i32_1 = arith.constant 0 : i32
    return %c0_i32, %c0_i32_0 : i32, i32
  }
  func.func @transform_5(%arg0: i32) -> (i32, i32) {
    %c0_i32 = arith.constant 0 : i32
    %c0_i32_0 = arith.constant 0 : i32
    %c0_i32_1 = arith.constant 0 : i32
    return %c0_i32, %c0_i32_0 : i32, i32
  }
  func.func @transform_6(%arg0: i32) -> (i32, i32) {
    %c0_i32 = arith.constant 0 : i32
    %c0_i32_0 = arith.constant 0 : i32
    %c0_i32_1 = arith.constant 0 : i32
    return %c0_i32, %c0_i32_0 : i32, i32
  }
  func.func @transform_7(%arg0: i32) -> (i32, i32) {
    %c0_i32 = arith.constant 0 : i32
    %c0_i32_0 = arith.constant 0 : i32
    return %c0_i32, %arg0 : i32, i32
  }
}

</mosaic_0001>

<bundles_post_ra>
// kernel: tpu_custom_call.1
= control target key start
LH: loop header
LB: loop body
LE: loop exit
PB: predicated region body
PF: predicated region fallthrough
CT: control target
= control target key end

     0   :  { %s411_s0 = inlined_call_operand.vmem [shape: f32[8,16], index: 0, kind: input, shape index: {}]   ;;  %s412_s1 = inlined_call_operand.vmem [shape: f32[32,16], index: 1, kind: input, shape index: {}]   ;;  %s413_s2 = inlined_call_operand.vmem [shape: f32[32,1], index: 2, kind: input, shape index: {}]   ;;  %s414_s3 = inlined_call_operand.vmem [shape: f32[32,32], index: 3, kind: input, shape index: {}]   ;;  %s415_s4 = inlined_call_operand.vmem [shape: f32[32,1], index: 4, kind: input, shape index: {}]   ;;  %s416_s5 = inlined_call_operand.vmem [shape: f32[32,1], index: 5, kind: input, shape index: {}]   ;;  %s417_s6 = inlined_call_operand.<no memory space> [shape: f32[1,1], index: 6, kind: input, shape index: {}]   ;;  %s418_s7 = inlined_call_operand.hbm [shape: f32[1,8], index: 7, kind: output, shape index: {}]  }
   0x1   :  { %v12_v0 = vstv %s417_s6 }
   0x2   :  { %13 = vst [vmem:[#allocation2] sm:$0x1] %v12_v0 }
   0x3   :  { %v29_v1 = vld [vmem:[%s411_s0] sm:$0xff]  ;;  %vm58_vm0 = vcmask 130048   ;;  %v37_v2 = vld [vmem:[%s413_s2 + $0x18] sm:$0xff]  ;;  %v294_v3 = vmov 0   ;;  %v31_v4 = vld [vmem:[%s412_s1 + $0x8] sm:$0xff] }
   0x4   :  { %265 = vset.pattern.permute.xlu0 %v294_v3  ;;  %258 = vmatpush.xpose.msk.msra.mxu3 %vm58_vm0, %v29_v1  ;;  %v35_v5 = vld [vmem:[%s413_s2 + $0x8] sm:$0xff]  ;;  %v30_v6 = vld [vmem:[%s412_s1] sm:$0xff] }
   0x5   :  { %55 = vperm.xlu0 %265, %v37_v2   ;;  %266 = vset.pattern.permute.xlu1 %v294_v3 }
   0x6   :  { %45 = vperm.xlu1 %266, %v35_v5   ;;  %249 = vmatpush.xpose.msk.msra.mxu0 %vm58_vm0, %v29_v1 }
   0x7   :  { %251 = vmatmul.msk.f32.vlgmr.msra.gmra.mxu3 %vm58_vm0, %v31_v4  ;;  %267 = vset.pattern.permute.xlu2 %v294_v3 }
   0x8   :  { %14 = vsyncpa [#allocation4], 0  ;;  %v36_v7 = vld [vmem:[%s413_s2 + $0x10] sm:$0xff]  ;;  %v34_v8 = vld [vmem:[%s413_s2] sm:$0xff]  ;;  %vm135_vm1 = vcmask 261120   ;;  %vm209_vm2 = vcmask 64512  }
   0x9   :  { %250 = vmatmul.msk.f32.vlgmr.msra.gmra.mxu0 %vm58_vm0, %v30_v6  ;;  %v32_v9 = vld [vmem:[%s412_s1 + $0x10] sm:$0xff]  ;;  %v114_v11 = vld [vmem:[%s415_s4 + $0x18] sm:$0xff]  ;;  %v182_v13 = vld [vmem:[%s416_s5 + $0x8] sm:$0xff]  ;;  %s240_s17 = sshll.u32 %s418_s7, 4  ;;  %vm231_vm3 = vcmask 57344   ;;  %s241_s17 = int_to_ptr.hbm [resolvable:$true] %s240_s17 }
   0xa   :  { %v113_v10 = vld [vmem:[%s415_s4 + $0x10] sm:$0xff]  ;;  %v33_v12 = vld [vmem:[%s412_s1 + $0x18] sm:$0xff]  ;;  %v223_v15 = vld [vmem:[#allocation2] sm:$0x1] }
   0xb   :  { %v183_v14 = vld [vmem:[%s416_s5 + $0x10] sm:$0xff]  ;;  %v111_v16 = vld [vmem:[%s415_s4] sm:$0xff]  ;;  %v112_v18 = vld [vmem:[%s415_s4 + $0x8] sm:$0xff] }
   0xc   :  { %117 = vperm.xlu2 %267, %v111_v16   ;;  %v181_v22 = vld [vmem:[%s416_s5] sm:$0xff]  ;;  %v184_v30 = vld [vmem:[%s416_s5 + $0x18] sm:$0xff]  ;;  %v109_v37 = vld [vmem:[%s414_s3 + $0x10] sm:$0xff] }
   0xd   :  { %50 = vperm.xlu0 %265, %v36_v7   ;;  %v107_v36 = vld [vmem:[%s414_s3] sm:$0xff]  ;;  %v108_v38 = vld [vmem:[%s414_s3 + $0x8] sm:$0xff]  ;;  %v110_v39 = vld [vmem:[%s414_s3 + $0x18] sm:$0xff]  ;;  %s295_s3 = smov [#allocation3]  }
   0xe   :  { %40 = vperm.xlu1 %266, %v34_v8   ;;  %s238_s14 = sshll.u32 %s295_s3, 4  ;;  %s239_s14 = int_to_ptr.vmem [resolvable:$true] %s238_s14 }
   0xf   :  { %252 = vmatmul.msk.f32.gmra.mxu3 %vm58_vm0, %v32_v9 }
  0x14   :  { %122 = vperm.xlu2 %267, %v112_v18  }
  0x15   :  { %127 = vperm.xlu0 %265, %v113_v10  }
  0x16   :  { %132 = vperm.xlu1 %266, %v114_v11  }
  0x17   :  { %253 = vmatmul.msk.f32.gmra.mxu3 %vm58_vm0, %v33_v12 }
  0x1c   :  { %187 = vperm.xlu2 %267, %v181_v22  }
  0x1d   :  { %192 = vperm.xlu0 %265, %v182_v13  }
  0x1e   :  { %197 = vperm.xlu1 %266, %v183_v14  }
  0x24   :  { %202 = vperm.xlu2 %267, %v184_v30  }
  0x25   :  { %226 = vperm.xlu0 %265, %v223_v15  }
  0x66   :  { %v118_v40 = vpop.permute.xlu2 %117 }
  0x6e   :  { %v123_v41 = vpop.permute.xlu2 %122 }
  0x76   :  { %v188_v49 = vpop.permute.xlu2 %187 }
  0x77   :  { %v56_v19 = vpop.permute.xlu0 %55 }
  0x78   :  { %v46_v21 = vpop.permute.xlu1 %45 }
  0x7e   :  { %v203_v1 = vpop.permute.xlu2 %202 }
  0x7f   :  { %v51_v23 = vpop.permute.xlu0 %50 }
  0x80   :  { %v41_v31 = vpop.permute.xlu1 %40 }
  0x86   :  { %v91_v27 = vpop.f32.mrf.mxu0 }
  0x87   :  { %v92_v33 = vadd.f32 %v91_v27, %v41_v31  ;;  %v128_v43 = vpop.permute.xlu0 %127 }
  0x88   :  { %v133_v45 = vpop.permute.xlu1 %132 }
  0x89   :  { %v103_v35 = vmax.f32 %v92_v33, 0.0 }
  0x8a   :  { %v94_v17 = vpop.f32.mrf.mxu3 }
  0x8b   :  { %v95_v28 = vadd.f32 %v94_v17, %v46_v21 }
  0x8d   :  { %v104_v34 = vmax.f32 %v95_v28, 0.0 }
  0x8f   :  { %v193_v55 = vpop.permute.xlu0 %192 }
  0x90   :  { %v198_v57 = vpop.permute.xlu1 %197 }
  0x92   :  { %v97_v20 = vpop.f32.mrf.mxu3 }
  0x93   :  { %v98_v25 = vadd.f32 %v97_v20, %v51_v23 }
  0x95   :  { %v105_v32 = vmax.f32 %v98_v25, 0.0 }
  0x97   :  { %v227_v11 = vpop.permute.xlu0 %226 }
  0x98   :  { %v229_v13 = vperm.slane %v227_v11, 0 }
  0x9a   :  { %v100_v24 = vpop.f32.mrf.mxu3 }
  0x9b   :  { %v101_v26 = vadd.f32 %v100_v24, %v56_v19 }
  0x9d   :  { %v106_v29 = vmax.f32 %v101_v26, 0.0 }
  0x9f   :  { %160 = vmatpush.msra.mxu1 %v106_v29  ;;  %259 = vmatpush.msra.mxu2 %v106_v29 }
  0xa1   :  { %161 = vmatpush.msra.mxu1 %v105_v32  ;;  %260 = vmatpush.msra.mxu2 %v105_v32 }
  0xa3   :  { %162 = vmatpush.msra.mxu1 %v104_v34  ;;  %261 = vmatpush.msra.mxu2 %v104_v34 }
  0xa5   :  { %163 = vmatpush.msra.mxu1 %v103_v35  ;;  %262 = vmatpush.msra.mxu2 %v103_v35 }
  0xa6   :  { %254 = vmatmul.msk.f32.vlgmr.msra.gmra.mxu1 %vm135_vm1, %v107_v36  ;;  %256 = vmatmul.msk.f32.vlgmr.msra.gmra.mxu2 %vm135_vm1, %v109_v37 }
  0xae   :  { %255 = vmatmul.msk.f32.gmra.mxu1 %vm135_vm1, %v108_v38  ;;  %257 = vmatmul.msk.f32.gmra.mxu2 %vm135_vm1, %v110_v39 }
 0x123   :  { %v165_v42 = vpop.f32.mrf.mxu1 }
 0x124   :  { %v166_v44 = vadd.f32 %v165_v42, %v118_v40 }
 0x126   :  { %v177_v47 = vmax.f32 %v166_v44, 0.0 }
 0x128   :  { %v205_v52 = vmul.f32 %v188_v49, %v177_v47 }
 0x129   :  { %v171_v46 = vpop.f32.mrf.mxu2 }
 0x12a   :  { %v172_v48 = vadd.f32 %v171_v46, %v128_v43  ;;  %v210_v59 = vsel %vm209_vm2, %v205_v52, 0.0 }
 0x12b   :  { %v168_v50 = vpop.f32.mrf.mxu1 }
 0x12c   :  { %v169_v51 = vadd.f32 %v168_v50, %v123_v41  ;;  %v179_v53 = vmax.f32 %v172_v48, 0.0 }
 0x12e   :  { %v178_v54 = vmax.f32 %v169_v51, 0.0  ;;  %v207_v60 = vmul.f32 %v198_v57, %v179_v53 }
 0x130   :  { %v206_v56 = vmul.f32 %v193_v55, %v178_v54  ;;  %v213_v2 = vsel %vm209_vm2, %v207_v60, 0.0 }
 0x131   :  { %v174_v58 = vpop.f32.mrf.mxu2 }
 0x132   :  { %v211_v61 = vsel %vm209_vm2, %v206_v56, 0.0  ;;  %v175_v62 = vadd.f32 %v174_v58, %v133_v45 }
 0x133   :  { %v212_v63 = vadd.f32 %v211_v61, %v210_v59 }
 0x134   :  { %v180_v0 = vmax.f32 %v175_v62, 0.0 }
 0x135   :  { %v214_v4 = vadd.f32 %v213_v2, %v212_v63 }
 0x136   :  { %v208_v3 = vmul.f32 %v203_v1, %v180_v0 }
 0x138   :  { %v215_v5 = vsel %vm209_vm2, %v208_v3, 0.0 }
 0x139   :  { %v216_v6 = vadd.f32 %v215_v5, %v214_v4 }
 0x13b   :  { %v217_v7 = vrot.slane %v216_v6, 4 }
 0x13d   :  { %v218_v8 = vadd.f32 %v217_v7, %v216_v6 }
 0x13f   :  { %v219_v9 = vrot.slane %v218_v8, 2 }
 0x141   :  { %v220_v10 = vadd.f32 %v219_v9, %v218_v8 }
 0x143   :  { %v221_v12 = vrot.slane %v220_v10, 1 }
 0x145   :  { %v222_v14 = vadd.f32 %v221_v12, %v220_v10 }
 0x147   :  { %v230_v15 = vadd.f32 %v229_v13, %v222_v14 }
 0x149   :  { %232 = vst.msk [vmem:[#allocation3] sm:$0x1] %vm231_vm3, %v230_v15 }
 0x14a   :  { %243 = dma.vmem_to_hbm [thread:$0]  %s239_s14, 16, %s241_s17, [#allocation4]  }
 0x14b   :  { %292 = dma.done.wait [#allocation4], 16  }
 0x14c   :  { %293 = vsyncadd [#allocation4], 4294967280 }
 0x14d   :  { %248 = vsyncpa [#allocation4], 1 }

</bundles_post_ra>
